<compile_context>
chip_gen: v5e
topology: v5e:2x2
jax: 0.10.0
libtpu: 0.0.40
codegen_flags: <defaults>
</compile_context>

<pallas_src>
import math
import jax
import jax.numpy as jnp
from jax.experimental import pallas as pl
from jax.experimental.pallas import tpu as pltpu

_MIB = 1024 * 1024


def _round_up(x, m):
    return (x + m - 1) // m * m


def _cdiv(a, b):
    return -(-a // b)


def _vmem_capacity_bytes(default=64 * _MIB):
    """Per-core VMEM capacity; conservative (v7x-sized) fallback if unavailable."""
    try:
        cap = getattr(pltpu.get_tpu_info(), "vmem_capacity_bytes", None)
        if cap:
            return int(cap)
    except Exception:
        pass
    return default


def _fused_embed_kernel(lhs_ref, rhs_ref, out_ref):
    # lhs_ref: (tm, K)      im2col taps + time features (compute dtype, bf16)
    # rhs_ref: (K, H_pad)   fused conv-tap + time-feature weights (bf16, resident)
    # out_ref: (tm, H_pad)  out dtype (bf16 by default); f32 MXU accumulation
    out_ref[...] = jnp.dot(
        lhs_ref[...], rhs_ref[...], preferred_element_type=jnp.float32
    ).astype(out_ref.dtype)


def data_embedding_wo_pos(x, x_mark, w_conv_torch, w_tf_torch,
                          *, compute_dtype=jnp.bfloat16,
                          out_dtype=jnp.bfloat16):
    """Forward pass of DataEmbedding_wo_pos (eval mode; dropout = identity).

    x            : (B, L, C_in)   float32
    x_mark       : (B, L, D_inp)  float32
    w_conv_torch : (H, C_in, 3)   Conv1d weight, PyTorch layout
    w_tf_torch   : (H, D_inp)     Linear weight (bias=False), PyTorch layout
    returns      : (B, L, H)      out_dtype (bf16 by default; f32 accumulation)
    """
    B, L, C_in = x.shape
    D_inp = x_mark.shape[-1]
    H = w_conv_torch.shape[0]
    K = 3 * C_in + D_inp

    # --- host-side im2col for the circular conv (kernel=3, padding=1) -------
    # tap k=0 reads x[(l-1) % L], k=1 reads x[l], k=2 reads x[(l+1) % L]
    # TODO(synk): for small H or fused pipelines, fold the 3-tap shift into the
    # kernel (halo blocks / in-kernel roll) instead of materializing a 3x LHS.
    x_m1 = jnp.roll(x, 1, axis=1)
    x_p1 = jnp.roll(x, -1, axis=1)
    lhs = jnp.concatenate([x_m1, x, x_p1, x_mark], axis=-1)        # (B, L, K)
    lhs = lhs.reshape(B * L, K).astype(compute_dtype)

    # --- fused RHS: conv weight (tap-major, channel-minor) over the TF weight
    w_conv = jnp.transpose(w_conv_torch, (2, 1, 0)).reshape(3 * C_in, H)
    rhs = jnp.concatenate([w_conv, w_tf_torch.T], axis=0)          # (K, H)
    rhs = rhs.astype(compute_dtype)

    # --- tiling: lane-dense H, 16-row-aligned tiles sized from VMEM ---------
    rows = B * L
    H_pad = _round_up(H, 128)
    lhs_isz = jnp.dtype(compute_dtype).itemsize
    out_isz = jnp.dtype(out_dtype).itemsize

    vmem_cap = _vmem_capacity_bytes()
    # v5e/v6e (128 MiB VMEM): raise scoped limit to 96 MiB; v7x (64 MiB): 48 MiB.
    vmem_limit = 96 * _MIB if vmem_cap >= 128 * _MIB else 48 * _MIB
    budget = vmem_limit - 8 * _MIB                      # headroom for internal scratch

    rows16 = _round_up(rows, 16)                        # bf16 sublane packing = 16
    per_row = 2 * K * lhs_isz + 2 * H_pad * out_isz     # double-buffered LHS + OUT
    fixed = 2 * K * H_pad * lhs_isz                     # resident RHS (tiny)
    tm_max = max(16, ((budget - fixed) // per_row) // 16 * 16)

    n_steps = _cdiv(rows16, tm_max)
    if n_steps == 1 and rows16 >= 32:
        n_steps = 2                                     # one block per TC on v7x
    if n_steps > 1 and n_steps % 2:
        n_steps += 1                                    # even grid for 2 TCs
    tm = _round_up(_cdiv(rows16, n_steps), 16)          # grid divides exactly
    rows_pad = n_steps * tm                             # overshoot <= ~16*n_steps rows

    lhs = jnp.pad(lhs, ((0, rows_pad - rows), (0, 0)))
    rhs = jnp.pad(rhs, ((0, 0), (0, H_pad - H)))

    cost = pl.CostEstimate(
        flops=2 * rows_pad * K * H_pad,
        transcendentals=0,
        bytes_accessed=(rows_pad * K * lhs_isz
                        + K * H_pad * lhs_isz
                        + rows_pad * H_pad * out_isz),
    )

    out_padded = pl.pallas_call(
        _fused_embed_kernel,
        out_shape=jax.ShapeDtypeStruct((rows_pad, H_pad), out_dtype),
        grid_spec=pltpu.PrefetchScalarGridSpec(
            num_scalar_prefetch=0,
            grid=(n_steps,),
            in_specs=[
                pl.BlockSpec((tm, K), lambda i: (i, 0)),      # row tile of LHS
                pl.BlockSpec((K, H_pad), lambda i: (0, 0)),   # fused weights (resident)
            ],
            out_specs=pl.BlockSpec((tm, H_pad), lambda i: (i, 0)),
        ),
        compiler_params=pltpu.CompilerParams(
            dimension_semantics=("parallel",),
            vmem_limit_bytes=vmem_limit,
        ),
        cost_estimate=cost,
    )(lhs, rhs)

    # TODO(synk): dropout (p=0.1) omitted — identity in eval mode; training mode
    # would use pltpu.prng_seed / pltpu.prng_random_bits in-kernel.
    return out_padded[:rows, :H].reshape(B, L, H)


if __name__ == "__main__":
    # small shapes consistent with DataEmbedding_wo_pos(c_in=4, hidden_size=32, freq='h')
    B, L, C_IN, HIDDEN = 2, 8, 4, 32
    D_INP = 4  # freq_map['h'] == 4

    key = jax.random.PRNGKey(0)
    k_x, k_mark, k_conv, k_tf = jax.random.split(key, 4)

    x = jax.random.normal(k_x, (B, L, C_IN), dtype=jnp.float32)
    x_mark = jax.random.normal(k_mark, (B, L, D_INP), dtype=jnp.float32)

    # Conv1d weight, PyTorch layout (H, C_in, 3), kaiming-normal (fan_in, leaky_relu)
    fan_in = C_IN * 3
    gain = math.sqrt(2.0 / (1.0 + 0.01 ** 2))
    std = gain / math.sqrt(fan_in)
    w_conv_torch = std * jax.random.normal(k_conv, (HIDDEN, C_IN, 3), dtype=jnp.float32)

    # Linear(d_inp, hidden, bias=False) weight, PyTorch layout (H, D_inp)
    bound = 1.0 / math.sqrt(D_INP)
    w_tf_torch = jax.random.uniform(k_tf, (HIDDEN, D_INP), dtype=jnp.float32,
                                    minval=-bound, maxval=bound)

    out = data_embedding_wo_pos(x, x_mark, w_conv_torch, w_tf_torch)
    out = jax.block_until_ready(out)

    # plain-JAX f32 reference (same math as the PyTorch module, no pos. embedding)
    x_pad = jnp.concatenate([x[:, -1:, :], x, x[:, :1, :]], axis=1)      # circular pad
    w_conv_kch = jnp.transpose(w_conv_torch, (2, 1, 0))                   # (3, C_in, H)
    ref = sum(jnp.einsum("blc,ch->blh", x_pad[:, k:k + L, :], w_conv_kch[k])
              for k in range(3))
    ref = ref + jnp.einsum("bld,dh->blh", x_mark, w_tf_torch.T)

    assert out.shape == (B, L, HIDDEN)
    # bf16 inputs/weights/output with f32 accumulation -> loosened tolerance
    assert jnp.allclose(out.astype(jnp.float32), ref, atol=5e-2, rtol=5e-2)

    print("KERNEL_OK")
</pallas_src>

<mosaic_0001>
module attributes {stable_mosaic.version = 11 : i64} {
  func.func @_fused_embed_kernel(%arg0: i32, %arg1: memref<16x16xbf16, #tpu.memory_space<vmem>>, %arg2: memref<16x128xbf16, #tpu.memory_space<vmem>>, %arg3: memref<16x128xbf16, #tpu.memory_space<vmem>>) attributes {dimension_semantics = [#tpu.dimension_semantics<parallel>], iteration_bounds = array<i64: 1>, scalar_prefetch = 0 : i64, scratch_operands = 0 : i64, tpu.core_type = #tpu.core_type<tc>, window_params = [{transform_indices = @transform_0, window_bounds = array<i64: 16, 16>}, {pipeline_mode = #tpu.pipeline_mode<synchronous>, transform_indices = @transform_1, window_bounds = array<i64: 16, 128>}, {transform_indices = @transform_2, window_bounds = array<i64: 16, 128>}]} {
    %c0 = arith.constant 0 : index
    %c0_0 = arith.constant 0 : index
    %0 = vector.load %arg1[%c0, %c0_0] : memref<16x16xbf16, #tpu.memory_space<vmem>>, vector<16x16xbf16>
    %c0_1 = arith.constant 0 : index
    %c0_2 = arith.constant 0 : index
    %1 = vector.load %arg2[%c0_1, %c0_2] : memref<16x128xbf16, #tpu.memory_space<vmem>>, vector<16x128xbf16>
    %cst = arith.constant dense<0.000000e+00> : vector<16x128xf32>
    %2 = tpu.matmul %0, %1, %cst {dimension_numbers = #tpu.dot_dimension_numbers<[1], [0], [0], [1], [0, 0, 1, 1], [], []>} : vector<16x16xbf16>, vector<16x128xbf16>, vector<16x128xf32> -> vector<16x128xf32>
    %3 = arith.truncf %2 : vector<16x128xf32> to vector<16x128xbf16>
    %c0_3 = arith.constant 0 : index
    %c0_4 = arith.constant 0 : index
    %4 = vector.load %arg3[%c0_3, %c0_4] : memref<16x128xbf16, #tpu.memory_space<vmem>>, vector<16x128xbf16>
    tpu.vector_store %arg3[%c0_3, %c0_4], %3 {strides = array<i32>} : memref<16x128xbf16, #tpu.memory_space<vmem>>, vector<16x128xbf16>,
    return
  }
  func.func @transform_0(%arg0: i32) -> (i32, i32) {
    %c0_i32 = arith.constant 0 : i32
    %c0_i32_0 = arith.constant 0 : i32
    return %arg0, %c0_i32 : i32, i32
  }
  func.func @transform_1(%arg0: i32) -> (i32, i32) {
    %c0_i32 = arith.constant 0 : i32
    %c0_i32_0 = arith.constant 0 : i32
    %c0_i32_1 = arith.constant 0 : i32
    return %c0_i32, %c0_i32_0 : i32, i32
  }
  func.func @transform_2(%arg0: i32) -> (i32, i32) {
    %c0_i32 = arith.constant 0 : i32
    %c0_i32_0 = arith.constant 0 : i32
    return %arg0, %c0_i32 : i32, i32
  }
}

</mosaic_0001>

<bundles_post_ra>
// kernel: tpu_custom_call.1
= control target key start
LH: loop header
LB: loop body
LE: loop exit
PB: predicated region body
PF: predicated region fallthrough
CT: control target
= control target key end

     0   :  { %7 = vsyncpa [#allocation3], 0  ;;  %s230_s0 = inlined_call_operand.hbm [shape: bf16[16,16], index: 0, kind: input, shape index: {}]   ;;  %s231_s1 = inlined_call_operand.hbm [shape: bf16[16,128], index: 1, kind: input, shape index: {}]   ;;  %s232_s2 = inlined_call_operand.hbm [shape: bf16[16,128], index: 2, kind: output, shape index: {}]  }
   0x1   :  { %8 = vsyncpa [#allocation6], 0 }
   0x2   :  { %9 = vsyncpa [#allocation4], 0  ;;  %s14_s11 = sshll.u32 %s230_s0, 4  ;;  %s201_s12 = smov [#allocation2]   ;;  %s15_s11 = int_to_ptr.hbm [resolvable:$true] %s14_s11 }
   0x3   :  { %s16_s13 = sshll.u32 %s201_s12, 4  ;;  %s27_s16 = sshll.u32 %s231_s1, 4  ;;  %s17_s13 = int_to_ptr.vmem [resolvable:$true] %s16_s13  ;;  %s28_s16 = int_to_ptr.hbm [resolvable:$true] %s27_s16 }
   0x4   :  { %s202_s17 = smov 64   ;;  %s203_s18 = smov 4  }
   0x5   :  { %22 = dma.hbm_to_vmem [thread:$0]  %s15_s11, 128, %s17_s13, [#allocation3], %s202_s17, %s202_s17, %s203_s18  }
   0x6   :  { %s204_s19 = smov [#allocation5]  }
   0x7   :  { %s29_s20 = sshll.u32 %s204_s19, 4  ;;  %s30_s20 = int_to_ptr.vmem [resolvable:$true] %s29_s20 }
   0x8   :  { %35 = dma.hbm_to_vmem [thread:$0]  %s28_s16, 128, %s30_s20, [#allocation6], %s202_s17, %s202_s17, %s203_s18  }
   0x9   :  { %195 = dma.done.wait [#allocation3], 128  }
   0xa   :  { %196 = vsyncadd [#allocation3], 4294967168 }
   0xb   :  { %197 = dma.done.wait [#allocation6], 128  }
   0xc   :  { %198 = vsyncadd [#allocation6], 4294967168  ;;  %v112_v0 = vld [vmem:[#allocation5] sm:$0xff]  ;;  %v111_v1 = vld [vmem:[#allocation2] sm:$0xff]  ;;  %vm60_vm0 = vcmask 130048   ;;  %s205_s0 = smov [#allocation7]  }
   0xd   :  { %71 = vmatpush.bf16.msra.mxu0 %v112_v0  ;;  %s86_s1 = sshll.u32 %s205_s0, 4  ;;  %s88_s23 = sshll.u32 %s232_s2, 4  ;;  %s87_s1 = int_to_ptr.vmem [resolvable:$true] %s86_s1  ;;  %s89_s23 = int_to_ptr.hbm [resolvable:$true] %s88_s23 }
  0x10   :  { %110 = vmatmul.msk.bf16.vlgmr.msra.gmra.mxu0 %vm60_vm0, %v111_v1 }
  0x8d   :  { %v73_v2 = vpop.f32.mrf.mxu0 }
  0x95   :  { %v75_v3 = vpop.f32.mrf.mxu0 }
  0x96   :  { %v116_v4 = vpack.c.bf16 %v75_v3, %v73_v2 }
  0x98   :  { %117 = vst [vmem:[#allocation7] sm:$0xff] %v116_v4  }
  0x99   :  { %94 = dma.vmem_to_hbm [thread:$0]  %s87_s1, 128, %s89_s23, [#allocation4], %s202_s17, %s202_s17, %s203_s18  }
  0x9a   :  { %199 = dma.done.wait [#allocation4], 128  }
  0x9b   :  { %200 = vsyncadd [#allocation4], 4294967168 }
  0x9c   :  { %99 = vsyncpa [#allocation3], 1 }
  0x9d   :  { %100 = vsyncpa [#allocation6], 1 }
  0x9e   :  { %101 = vsyncpa [#allocation4], 1 }

</bundles_post_ra>
